<compile_context>
chip_gen: v6e
topology: v6e:2x2x1
jax: 0.10.0
libtpu: 0.0.40
codegen_flags: <defaults>
</compile_context>

<pallas_src>
import functools

import jax
import jax.numpy as jnp
import numpy as np
from jax.experimental import pallas as pl
from jax.experimental.pallas import tpu as pltpu


# ---------------------------------------------------------------------------
# Pallas kernel: one batch tile (bt graphs, bt*N node rows / bt*E edge rows).
# ---------------------------------------------------------------------------
def _egcl_vel_kernel(
    # batched data: one packed slab [bt*N, F+6] = [h | coord | vel]
    x_ref,
    # shared structural constants (f32, single-buffered)
    grc_ref, gdiff_ref, ssum_ref, invcnt_ref,
    # shared weights
    wnode_ref,          # fused [F, 4H] = [we1a | we1b | wn1h | wv1]
    we2_ref, wc1_ref, wc2_ref, wn1a_ref, wn2_ref, wv2_ref,
    # packed small rows: [we1c, be1, be2, bc1, bn1, bn2, bv1, bv2]
    pack_ref,
    # single packed output slab [bt*N, out_nf+6] = [h_out | new_coord | new_vel]
    out_ref,
    *, n, e, feat, hdim, out_nf, bt, coords_weight):
  f32 = jnp.float32
  dot = functools.partial(jnp.dot, preferred_element_type=f32)
  relu = lambda v: jnp.maximum(v, 0.0)

  # ---- hoisted loads (everything below the per-graph loop is batched) -------
  x = x_ref[...]                               # [bt*N, F+6]
  h2 = x[:, 0:feat]                            # [bt*N, F]
  coord2 = x[:, feat:feat + 3]                 # [bt*N, 3]
  vel2 = x[:, feat + 3:feat + 6]               # [bt*N, 3]

  g_rc = grc_ref[...]                          # [E, 2N]  = [onehot_row | onehot_col]
  g_diff = gdiff_ref[...]                      # [E, N]   = onehot_row - onehot_col
  s_sum = ssum_ref[...]                        # [N, E]   scatter-sum matrix
  inv_cnt = invcnt_ref[...]                    # [N, 1]   1 / max(count, 1)
  if bt > 1:
    inv_cnt = jnp.tile(inv_cnt, (bt, 1))       # [bt*N, 1]

  we2 = we2_ref[...]
  wc1 = wc1_ref[...]
  wc2 = wc2_ref[...]
  wn1a = wn1a_ref[...]
  wn2 = wn2_ref[...]
  wv2 = wv2_ref[...]

  we1c = pack_ref[0:1, :hdim]
  be1 = pack_ref[1:2, :hdim]
  be2 = pack_ref[2:3, :hdim]
  bc1 = pack_ref[3:4, :hdim]
  bn1 = pack_ref[4:5, :hdim]
  bn2 = pack_ref[5:6, :out_nf]
  bv1 = pack_ref[6:7, :hdim]
  bv2 = pack_ref[7:8, 0:1]

  # ---- fused node-level projections: ONE lane-dense [*, 4H] matmul ----------
  proj = dot(h2, wnode_ref[...])               # [bt*N, 4H]
  p_row = proj[:, 0:hdim]                      # h @ We1[:F]       (edge-MLP, row part)
  p_col = proj[:, hdim:2 * hdim]               # h @ We1[F:2F]     (edge-MLP, col part)
  p_nh = proj[:, 2 * hdim:3 * hdim]            # node-MLP h part
  v1pre = proj[:, 3 * hdim:4 * hdim]           # coord_mlp_vel first layer (pre-bias)

  # ---- per-graph STRUCTURAL matmuls only (edge structure shared over batch) -
  e1_parts = []
  cd_parts = []
  for b in range(bt):
    sl = slice(b * n, (b + 1) * n)
    # fused row/col gather: one [E,2N]@[2N,H] matmul
    p_rc = jnp.concatenate([p_row[sl], p_col[sl]], axis=0)   # [2N, H]
    e1_parts.append(dot(g_rc, p_rc))                         # [E, H]
    cd_parts.append(dot(g_diff, coord2[sl]))                 # [E, 3]
  e1_pre = jnp.concatenate(e1_parts, axis=0)                 # [bt*E, H]
  cd = jnp.concatenate(cd_parts, axis=0)                     # [bt*E, 3]

  # ---- edge-level dense work, batched over bt*E rows -------------------------
  radial = jnp.sum(cd * cd, axis=-1, keepdims=True)          # [bt*E, 1]

  # edge_mlp: Linear(2F+1 -> H), ReLU, Linear(H -> H), ReLU
  e1 = relu(e1_pre + radial * we1c + be1)
  edge_feat = relu(dot(e1, we2) + be2)                       # [bt*E, H]

  # coord_mlp: Linear(H->H), ReLU, Linear(H->1, no bias); unconditional clamp
  c1 = relu(dot(edge_feat, wc1) + bc1)
  cscale = dot(c1, wc2)                                      # [bt*E, 1]
  trans = jnp.clip(cd * cscale, -100.0, 100.0)               # [bt*E, 3]

  # ---- fused scatter: one [N,E]@[E,H+3] matmul per graph ---------------------
  ef_tr = jnp.concatenate([edge_feat, trans], axis=-1)       # [bt*E, H+3]
  agg_parts = []
  for b in range(bt):
    agg_parts.append(dot(s_sum, ef_tr[b * e:(b + 1) * e]))   # [N, H+3]
  agg = jnp.concatenate(agg_parts, axis=0)                   # [bt*N, H+3]
  agg_sum = agg[:, 0:hdim]                                   # scatter-sum(edge_feat)
  agg_mean = agg[:, hdim:hdim + 3] * inv_cnt                 # scatter-mean(trans)

  # ---- node-level update, batched over bt*N rows -----------------------------
  # coord_mlp_vel: Linear(F->H), ReLU, Linear(H->1)
  v1 = relu(v1pre + bv1)
  vscale = dot(v1, wv2) + bv2                                # [bt*N, 1]

  new_vel = agg_mean * coords_weight + vscale * vel2         # [bt*N, 3]
  new_coord = coord2 + new_vel

  # node_mlp (recurrent residual): Linear(F+H->H), ReLU, Linear(H->out) + h
  n1 = relu(p_nh + dot(agg_sum, wn1a) + bn1)
  h_new = dot(n1, wn2) + bn2 + h2                            # [bt*N, out_nf]

  # ---- single full-block store of the packed output slab ---------------------
  out_ref[...] = jnp.concatenate([h_new, new_coord, new_vel],
                                 axis=-1).astype(out_ref.dtype)


# ---------------------------------------------------------------------------
# Wrapper helpers
# ---------------------------------------------------------------------------
def _vmem_limit_bytes():
  """Generation-aware VMEM limit (v7x only has 64 MiB physical)."""
  cap = 128 * 1024 * 1024
  try:
    info = pltpu.get_tpu_info()
    cap = int(getattr(info, "vmem_capacity_bytes", cap) or cap)
  except Exception:
    pass
  return int(min(48 * 1024 * 1024, 0.70 * cap))


def _pick_batch_tile(B, N, F, out_nf, H, E, vmem_limit):
  """Largest graphs-per-step tile that fits the VMEM budget while keeping
  >= 2 grid steps (so v7x can shard the 'parallel' axis over both cores)."""
  def tile_bytes(bt):
    io = 2 * bt * N * ((F + 6) + (out_nf + 6)) * 4           # double-buffered in/out
    act = bt * 4 * (N * (4 * H + (H + 3) + (out_nf + 6) + 8)
                    + E * (2 * H + 2 * (H + 3) + 8))         # rough live intermediates
    return io + act

  best = 1
  for bt in range(1, B + 1):
    if B % bt:
      continue
    if (bt * N) % 8 != 0 and bt != B:
      continue                                               # keep 8-sublane-aligned blocks
    if B >= 2 and B // bt < 2:
      continue                                               # >= 2 grid steps for megacore
    if tile_bytes(bt) > vmem_limit // 3:
      continue
    best = bt
  return best


# ---------------------------------------------------------------------------
# Forward wrapper
# ---------------------------------------------------------------------------
def e_gcl_vel_forward(h, edge_index, coord, vel, params, coords_weight=1.0,
                      batch_tile=None):
  """Forward pass of E_GCL_vel (recurrent=True, markov=True, no attention,
  no tanh, norm_diff=False, edges_in_d=0, nodes_att_dim=0)."""
  row, col = edge_index
  B, N, F = h.shape
  E = int(row.shape[0])
  dtype = h.dtype
  H = params["we2"].shape[0]
  out_nf = params["wn2"].shape[1]
  # recurrent residual (out = out + h) requires matching widths
  assert out_nf == F, "output_nf must equal input_nf for the recurrent residual"

  vmem_limit = _vmem_limit_bytes()
  if batch_tile is None:
    batch_tile = _pick_batch_tile(B, N, F, out_nf, H, E, vmem_limit)
  bt = batch_tile
  assert B % bt == 0, "batch must be divisible by batch_tile"

  f32 = jnp.float32

  # --- structural constants from the (static) edge index, f32 ----------------
  onehot_row = jax.nn.one_hot(row, N, dtype=f32)             # [E, N]
  onehot_col = jax.nn.one_hot(col, N, dtype=f32)             # [E, N]
  g_rc = jnp.concatenate([onehot_row, onehot_col], axis=1)   # [E, 2N] fused gather
  g_diff = onehot_row - onehot_col                           # [E, N]  coord-diff gather
  s_sum = onehot_col.T                                       # [N, E]  scatter-sum
  cnt = jnp.maximum(jnp.sum(onehot_col, axis=0), 1.0)        # [N]
  inv_cnt = (1.0 / cnt).reshape(N, 1).astype(f32)            # [N, 1]

  # --- fused node-projection weight [F, 4H] -----------------------------------
  w_node = jnp.concatenate(
      [params["we1a"], params["we1b"], params["wn1h"], params["wv1"]],
      axis=1).astype(f32)

  # --- pack all [1, *] rows (we1c + 7 biases) into a single (8, Dmax) tile ----
  dmax = max(H, out_nf)
  def _rowvec(v):
    v = jnp.reshape(v, (-1,)).astype(f32)
    return jnp.pad(v, (0, dmax - v.shape[0]))
  pack = jnp.stack([_rowvec(params["we1c"]), _rowvec(params["be1"]),
                    _rowvec(params["be2"]), _rowvec(params["bc1"]),
                    _rowvec(params["bn1"]), _rowvec(params["bn2"]),
                    _rowvec(params["bv1"]), _rowvec(params["bv2"])], axis=0)

  # --- pack batched node tensors into one lane-wise slab [B*N, F+6] -----------
  x2d = jnp.concatenate([h, coord, vel], axis=-1).reshape(B * N, F + 6).astype(f32)

  shared = [g_rc, g_diff, s_sum, inv_cnt, w_node,
            params["we2"].astype(f32), params["wc1"].astype(f32),
            params["wc2"].astype(f32), params["wn1a"].astype(f32),
            params["wn2"].astype(f32), params["wv2"].astype(f32), pack]

  def _const_spec(a):
    # constant blocks: single-buffered to halve their VMEM reservation
    return pl.BlockSpec(a.shape, lambda b: (0, 0), pipeline_mode=pl.Buffered(1))

  in_specs = [pl.BlockSpec((bt * N, F + 6), lambda b: (b, 0))] + \
             [_const_spec(a) for a in shared]

  out_shape = jax.ShapeDtypeStruct((B * N, out_nf + 6), dtype)
  out_specs = pl.BlockSpec((bt * N, out_nf + 6), lambda b: (b, 0))

  kernel = functools.partial(
      _egcl_vel_kernel, n=N, e=E, feat=F, hdim=H, out_nf=out_nf, bt=bt,
      coords_weight=float(coords_weight))

  packed = pl.pallas_call(
      kernel,
      out_shape=out_shape,
      grid=(B // bt,),
      in_specs=in_specs,
      out_specs=out_specs,
      compiler_params=pltpu.CompilerParams(
          dimension_semantics=("parallel",),
          vmem_limit_bytes=vmem_limit),
  )(x2d, *shared)

  packed = packed.reshape(B, N, out_nf + 6)
  h_out = packed[..., 0:out_nf]
  new_coord = packed[..., out_nf:out_nf + 3]
  new_vel = packed[..., out_nf + 3:out_nf + 6]
  return h_out, new_coord, new_vel


# ---------------------------------------------------------------------------
# Pure-JAX reference (uses .at[].add scatter, independent of the kernel path)
# ---------------------------------------------------------------------------
def e_gcl_vel_reference(h, edge_index, coord, vel, p, coords_weight=1.0):
  row, col = edge_index
  B, N, F = h.shape
  relu = jax.nn.relu

  cd = coord[:, row] - coord[:, col]                        # [B, E, 3]
  radial = jnp.sum(cd ** 2, -1, keepdims=True)              # [B, E, 1]

  e1 = relu(h[:, row] @ p["we1a"] + h[:, col] @ p["we1b"]
            + radial * p["we1c"] + p["be1"])
  edge_feat = relu(e1 @ p["we2"] + p["be2"])                # [B, E, H]

  c1 = relu(edge_feat @ p["wc1"] + p["bc1"])
  cscale = c1 @ p["wc2"]                                    # [B, E, 1]
  trans = jnp.clip(cd * cscale, -100.0, 100.0)

  cnt = jnp.zeros((N,), h.dtype).at[col].add(1.0)
  cnt = jnp.maximum(cnt, 1.0)[None, :, None]
  agg_mean = jnp.zeros((B, N, 3), h.dtype).at[:, col].add(trans) / cnt

  v1 = relu(h @ p["wv1"] + p["bv1"])
  vscale = v1 @ p["wv2"] + p["bv2"]
  new_vel = agg_mean * coords_weight + vscale * vel
  new_coord = coord + new_vel

  agg_sum = jnp.zeros((B, N, p["we2"].shape[1]), h.dtype).at[:, col].add(edge_feat)
  n1 = relu(h @ p["wn1h"] + agg_sum @ p["wn1a"] + p["bn1"])
  h_out = n1 @ p["wn2"] + p["bn2"] + h
  return h_out, new_coord, new_vel


# ---------------------------------------------------------------------------
# Main
# ---------------------------------------------------------------------------
if __name__ == "__main__":
  B, N = 2, 8
  input_nf = output_nf = hidden_nf = 32
  F, H = input_nf, hidden_nf

  key = jax.random.PRNGKey(0)
  ks = jax.random.split(key, 24)

  def u(k, shape, scale=0.1):
    return jax.random.uniform(k, shape, jnp.float32, -scale, scale)

  params = {
      # edge_mlp: Linear(2F+1 -> H) split into [F->H] + [F->H] + [1->H]
      "we1a": u(ks[0], (F, H)), "we1b": u(ks[1], (F, H)),
      "we1c": u(ks[2], (1, H)), "be1": u(ks[3], (1, H)),
      "we2": u(ks[4], (H, H)), "be2": u(ks[5], (1, H)),
      # coord_mlp: Linear(H->H), ReLU, Linear(H->1, no bias, xavier gain=0.001)
      "wc1": u(ks[6], (H, H)), "bc1": u(ks[7], (1, H)),
      "wc2": u(ks[8], (H, 1)) * 0.001,
      # node_mlp: Linear(F+H -> H) split into [F->H] + [H->H], then Linear(H->out)
      "wn1h": u(ks[9], (F, H)), "wn1a": u(ks[10], (H, H)),
      "bn1": u(ks[11], (1, H)),
      "wn2": u(ks[12], (H, output_nf)), "bn2": u(ks[13], (1, output_nf)),
      # coord_mlp_vel: Linear(F->H), ReLU, Linear(H->1)
      "wv1": u(ks[14], (F, H)), "bv1": u(ks[15], (1, H)),
      "wv2": u(ks[16], (H, 1)), "bv2": u(ks[17], (1, 1)),
  }

  h = jax.random.normal(ks[18], (B, N, F), jnp.float32)
  coord = jax.random.normal(ks[19], (B, N, 3), jnp.float32)
  vel = jax.random.normal(ks[20], (B, N, 3), jnp.float32)

  # fully connected (i != j) edge index, E = N*(N-1)
  rows, cols = [], []
  for i in range(N):
    for j in range(N):
      if i != j:
        rows.append(i)
        cols.append(j)
  row = jnp.array(rows, jnp.int32)
  col = jnp.array(cols, jnp.int32)
  edge_index = (row, col)

  h_out, coord_out, vel_out = e_gcl_vel_forward(h, edge_index, coord, vel, params)
  jax.block_until_ready((h_out, coord_out, vel_out))

  h_ref, coord_ref, vel_ref = e_gcl_vel_reference(h, edge_index, coord, vel, params)

  np.testing.assert_allclose(np.asarray(h_out), np.asarray(h_ref), atol=1e-4, rtol=1e-4)
  np.testing.assert_allclose(np.asarray(coord_out), np.asarray(coord_ref), atol=1e-4, rtol=1e-4)
  np.testing.assert_allclose(np.asarray(vel_out), np.asarray(vel_ref), atol=1e-4, rtol=1e-4)

  print("KERNEL_OK")
</pallas_src>

<mosaic_0001>
module attributes {stable_mosaic.version = 11 : i64} {
  func.func @_egcl_vel_kernel(%arg0: i32, %arg1: memref<8x38xf32, #tpu.memory_space<vmem>>, %arg2: memref<56x16xf32, #tpu.memory_space<vmem>>, %arg3: memref<56x8xf32, #tpu.memory_space<vmem>>, %arg4: memref<8x56xf32, #tpu.memory_space<vmem>>, %arg5: memref<8x1xf32, #tpu.memory_space<vmem>>, %arg6: memref<32x128xf32, #tpu.memory_space<vmem>>, %arg7: memref<32x32xf32, #tpu.memory_space<vmem>>, %arg8: memref<32x32xf32, #tpu.memory_space<vmem>>, %arg9: memref<32x1xf32, #tpu.memory_space<vmem>>, %arg10: memref<32x32xf32, #tpu.memory_space<vmem>>, %arg11: memref<32x32xf32, #tpu.memory_space<vmem>>, %arg12: memref<32x1xf32, #tpu.memory_space<vmem>>, %arg13: memref<8x32xf32, #tpu.memory_space<vmem>>, %arg14: memref<8x38xf32, #tpu.memory_space<vmem>>) attributes {dimension_semantics = [#tpu.dimension_semantics<parallel>], iteration_bounds = array<i64: 2>, scalar_prefetch = 0 : i64, scratch_operands = 0 : i64, tpu.core_type = #tpu.core_type<tc>, window_params = [{transform_indices = @transform_0, window_bounds = array<i64: 8, 38>}, {pipeline_mode = #tpu.pipeline_mode<synchronous>, transform_indices = @transform_1, window_bounds = array<i64: 56, 16>}, {pipeline_mode = #tpu.pipeline_mode<synchronous>, transform_indices = @transform_2, window_bounds = array<i64: 56, 8>}, {pipeline_mode = #tpu.pipeline_mode<synchronous>, transform_indices = @transform_3, window_bounds = array<i64: 8, 56>}, {pipeline_mode = #tpu.pipeline_mode<synchronous>, transform_indices = @transform_4, window_bounds = array<i64: 8, 1>}, {pipeline_mode = #tpu.pipeline_mode<synchronous>, transform_indices = @transform_5, window_bounds = array<i64: 32, 128>}, {pipeline_mode = #tpu.pipeline_mode<synchronous>, transform_indices = @transform_6, window_bounds = array<i64: 32, 32>}, {pipeline_mode = #tpu.pipeline_mode<synchronous>, transform_indices = @transform_7, window_bounds = array<i64: 32, 32>}, {pipeline_mode = #tpu.pipeline_mode<synchronous>, transform_indices = @transform_8, window_bounds = array<i64: 32, 1>}, {pipeline_mode = #tpu.pipeline_mode<synchronous>, transform_indices = @transform_9, window_bounds = array<i64: 32, 32>}, {pipeline_mode = #tpu.pipeline_mode<synchronous>, transform_indices = @transform_10, window_bounds = array<i64: 32, 32>}, {pipeline_mode = #tpu.pipeline_mode<synchronous>, transform_indices = @transform_11, window_bounds = array<i64: 32, 1>}, {pipeline_mode = #tpu.pipeline_mode<synchronous>, transform_indices = @transform_12, window_bounds = array<i64: 8, 32>}, {transform_indices = @transform_13, window_bounds = array<i64: 8, 38>}]} {
    %c0 = arith.constant 0 : index
    %c0_0 = arith.constant 0 : index
    %0 = vector.load %arg1[%c0, %c0_0] : memref<8x38xf32, #tpu.memory_space<vmem>>, vector<8x38xf32>
    %1 = vector.extract_strided_slice %0 {offsets = [0, 0], sizes = [8, 32], strides = [1, 1]} : vector<8x38xf32> to vector<8x32xf32>
    %2 = vector.extract_strided_slice %0 {offsets = [0, 32], sizes = [8, 3], strides = [1, 1]} : vector<8x38xf32> to vector<8x3xf32>
    %3 = vector.extract_strided_slice %0 {offsets = [0, 35], sizes = [8, 3], strides = [1, 1]} : vector<8x38xf32> to vector<8x3xf32>
    %c0_1 = arith.constant 0 : index
    %c0_2 = arith.constant 0 : index
    %4 = vector.load %arg2[%c0_1, %c0_2] : memref<56x16xf32, #tpu.memory_space<vmem>>, vector<56x16xf32>
    %c0_3 = arith.constant 0 : index
    %c0_4 = arith.constant 0 : index
    %5 = vector.load %arg3[%c0_3, %c0_4] : memref<56x8xf32, #tpu.memory_space<vmem>>, vector<56x8xf32>
    %c0_5 = arith.constant 0 : index
    %c0_6 = arith.constant 0 : index
    %6 = vector.load %arg4[%c0_5, %c0_6] : memref<8x56xf32, #tpu.memory_space<vmem>>, vector<8x56xf32>
    %c0_7 = arith.constant 0 : index
    %c0_8 = arith.constant 0 : index
    %7 = vector.load %arg5[%c0_7, %c0_8] : memref<8x1xf32, #tpu.memory_space<vmem>>, vector<8x1xf32>
    %c0_9 = arith.constant 0 : index
    %c0_10 = arith.constant 0 : index
    %8 = vector.load %arg7[%c0_9, %c0_10] : memref<32x32xf32, #tpu.memory_space<vmem>>, vector<32x32xf32>
    %c0_11 = arith.constant 0 : index
    %c0_12 = arith.constant 0 : index
    %9 = vector.load %arg8[%c0_11, %c0_12] : memref<32x32xf32, #tpu.memory_space<vmem>>, vector<32x32xf32>
    %c0_13 = arith.constant 0 : index
    %c0_14 = arith.constant 0 : index
    %10 = vector.load %arg9[%c0_13, %c0_14] : memref<32x1xf32, #tpu.memory_space<vmem>>, vector<32x1xf32>
    %c0_15 = arith.constant 0 : index
    %c0_16 = arith.constant 0 : index
    %11 = vector.load %arg10[%c0_15, %c0_16] : memref<32x32xf32, #tpu.memory_space<vmem>>, vector<32x32xf32>
    %c0_17 = arith.constant 0 : index
    %c0_18 = arith.constant 0 : index
    %12 = vector.load %arg11[%c0_17, %c0_18] : memref<32x32xf32, #tpu.memory_space<vmem>>, vector<32x32xf32>
    %c0_19 = arith.constant 0 : index
    %c0_20 = arith.constant 0 : index
    %13 = vector.load %arg12[%c0_19, %c0_20] : memref<32x1xf32, #tpu.memory_space<vmem>>, vector<32x1xf32>
    %c0_21 = arith.constant 0 : index
    %c0_22 = arith.constant 0 : index
    %14 = vector.load %arg13[%c0_21, %c0_22] : memref<8x32xf32, #tpu.memory_space<vmem>>, vector<1x32xf32>
    %c1 = arith.constant 1 : index
    %c0_23 = arith.constant 0 : index
    %15 = vector.load %arg13[%c1, %c0_23] : memref<8x32xf32, #tpu.memory_space<vmem>>, vector<1x32xf32>
    %c2 = arith.constant 2 : index
    %c0_24 = arith.constant 0 : index
    %16 = vector.load %arg13[%c2, %c0_24] : memref<8x32xf32, #tpu.memory_space<vmem>>, vector<1x32xf32>
    %c3 = arith.constant 3 : index
    %c0_25 = arith.constant 0 : index
    %17 = vector.load %arg13[%c3, %c0_25] : memref<8x32xf32, #tpu.memory_space<vmem>>, vector<1x32xf32>
    %c4 = arith.constant 4 : index
    %c0_26 = arith.constant 0 : index
    %18 = vector.load %arg13[%c4, %c0_26] : memref<8x32xf32, #tpu.memory_space<vmem>>, vector<1x32xf32>
    %c5 = arith.constant 5 : index
    %c0_27 = arith.constant 0 : index
    %19 = vector.load %arg13[%c5, %c0_27] : memref<8x32xf32, #tpu.memory_space<vmem>>, vector<1x32xf32>
    %c6 = arith.constant 6 : index
    %c0_28 = arith.constant 0 : index
    %20 = vector.load %arg13[%c6, %c0_28] : memref<8x32xf32, #tpu.memory_space<vmem>>, vector<1x32xf32>
    %c7 = arith.constant 7 : index
    %c0_29 = arith.constant 0 : index
    %21 = vector.load %arg13[%c7, %c0_29] : memref<8x32xf32, #tpu.memory_space<vmem>>, vector<1x1xf32>
    %c0_30 = arith.constant 0 : index
    %c0_31 = arith.constant 0 : index
    %22 = vector.load %arg6[%c0_30, %c0_31] : memref<32x128xf32, #tpu.memory_space<vmem>>, vector<32x128xf32>
    %cst = arith.constant dense<0.000000e+00> : vector<8x128xf32>
    %23 = tpu.matmul %1, %22, %cst {dimension_numbers = #tpu.dot_dimension_numbers<[1], [0], [0], [1], [0, 0, 1, 1], [], []>} : vector<8x32xf32>, vector<32x128xf32>, vector<8x128xf32> -> vector<8x128xf32>
    %24 = vector.extract_strided_slice %23 {offsets = [0, 0], sizes = [8, 32], strides = [1, 1]} : vector<8x128xf32> to vector<8x32xf32>
    %25 = vector.extract_strided_slice %23 {offsets = [0, 32], sizes = [8, 32], strides = [1, 1]} : vector<8x128xf32> to vector<8x32xf32>
    %26 = vector.extract_strided_slice %23 {offsets = [0, 64], sizes = [8, 32], strides = [1, 1]} : vector<8x128xf32> to vector<8x32xf32>
    %27 = vector.extract_strided_slice %23 {offsets = [0, 96], sizes = [8, 32], strides = [1, 1]} : vector<8x128xf32> to vector<8x32xf32>
    %28 = tpu.concatenate %24, %25 in 0 : vector<8x32xf32>, vector<8x32xf32> -> vector<16x32xf32>
    %cst_32 = arith.constant dense<0.000000e+00> : vector<56x32xf32>
    %29 = tpu.matmul %4, %28, %cst_32 {dimension_numbers = #tpu.dot_dimension_numbers<[1], [0], [0], [1], [0, 0, 1, 1], [], []>} : vector<56x16xf32>, vector<16x32xf32>, vector<56x32xf32> -> vector<56x32xf32>
    %cst_33 = arith.constant dense<0.000000e+00> : vector<56x3xf32>
    %30 = tpu.matmul %5, %2, %cst_33 {dimension_numbers = #tpu.dot_dimension_numbers<[1], [0], [0], [1], [0, 0, 1, 1], [], []>} : vector<56x8xf32>, vector<8x3xf32>, vector<56x3xf32> -> vector<56x3xf32>
    %31 = arith.mulf %30, %30 : vector<56x3xf32>
    %cst_34 = arith.constant dense<0.000000e+00> : vector<56xf32>
    %32 = vector.multi_reduction <add>, %31, %cst_34 [1] : vector<56x3xf32> to vector<56xf32>
    %33 = vector.shape_cast %32 : vector<56xf32> to vector<56x1xf32>
    %34 = vector.broadcast %33 : vector<56x1xf32> to vector<56x32xf32>
    %35 = vector.broadcast %14 : vector<1x32xf32> to vector<56x32xf32>
    %36 = arith.mulf %34, %35 : vector<56x32xf32>
    %37 = arith.addf %29, %36 : vector<56x32xf32>
    %38 = vector.broadcast %15 : vector<1x32xf32> to vector<56x32xf32>
    %39 = arith.addf %37, %38 : vector<56x32xf32>
    %cst_35 = arith.constant 0.000000e+00 : f32
    %40 = vector.broadcast %cst_35 : f32 to vector<56x32xf32>
    %41 = arith.maximumf %39, %40 : vector<56x32xf32>
    %cst_36 = arith.constant dense<0.000000e+00> : vector<56x32xf32>
    %42 = tpu.matmul %41, %8, %cst_36 {dimension_numbers = #tpu.dot_dimension_numbers<[1], [0], [0], [1], [0, 0, 1, 1], [], []>} : vector<56x32xf32>, vector<32x32xf32>, vector<56x32xf32> -> vector<56x32xf32>
    %43 = vector.broadcast %16 : vector<1x32xf32> to vector<56x32xf32>
    %44 = arith.addf %42, %43 : vector<56x32xf32>
    %cst_37 = arith.constant 0.000000e+00 : f32
    %45 = vector.broadcast %cst_37 : f32 to vector<56x32xf32>
    %46 = arith.maximumf %44, %45 : vector<56x32xf32>
    %cst_38 = arith.constant dense<0.000000e+00> : vector<56x32xf32>
    %47 = tpu.matmul %46, %9, %cst_38 {dimension_numbers = #tpu.dot_dimension_numbers<[1], [0], [0], [1], [0, 0, 1, 1], [], []>} : vector<56x32xf32>, vector<32x32xf32>, vector<56x32xf32> -> vector<56x32xf32>
    %48 = vector.broadcast %17 : vector<1x32xf32> to vector<56x32xf32>
    %49 = arith.addf %47, %48 : vector<56x32xf32>
    %cst_39 = arith.constant 0.000000e+00 : f32
    %50 = vector.broadcast %cst_39 : f32 to vector<56x32xf32>
    %51 = arith.maximumf %49, %50 : vector<56x32xf32>
    %cst_40 = arith.constant dense<0.000000e+00> : vector<56x1xf32>
    %52 = tpu.matmul %51, %10, %cst_40 {dimension_numbers = #tpu.dot_dimension_numbers<[1], [0], [0], [1], [0, 0, 1, 1], [], []>} : vector<56x32xf32>, vector<32x1xf32>, vector<56x1xf32> -> vector<56x1xf32>
    %53 = vector.broadcast %52 : vector<56x1xf32> to vector<56x3xf32>
    %54 = arith.mulf %30, %53 : vector<56x3xf32>
    %cst_41 = arith.constant -1.000000e+02 : f32
    %cst_42 = arith.constant 1.000000e+02 : f32
    %55 = vector.broadcast %cst_41 : f32 to vector<56x3xf32>
    %56 = arith.maximumf %55, %54 : vector<56x3xf32>
    %57 = vector.broadcast %cst_42 : f32 to vector<56x3xf32>
    %58 = arith.minimumf %57, %56 : vector<56x3xf32>
    %59 = tpu.concatenate %46, %58 in 1 : vector<56x32xf32>, vector<56x3xf32> -> vector<56x35xf32>
    %cst_43 = arith.constant dense<0.000000e+00> : vector<8x35xf32>
    %60 = tpu.matmul %6, %59, %cst_43 {dimension_numbers = #tpu.dot_dimension_numbers<[1], [0], [0], [1], [0, 0, 1, 1], [], []>} : vector<8x56xf32>, vector<56x35xf32>, vector<8x35xf32> -> vector<8x35xf32>
    %61 = vector.extract_strided_slice %60 {offsets = [0, 0], sizes = [8, 32], strides = [1, 1]} : vector<8x35xf32> to vector<8x32xf32>
    %62 = vector.extract_strided_slice %60 {offsets = [0, 32], sizes = [8, 3], strides = [1, 1]} : vector<8x35xf32> to vector<8x3xf32>
    %63 = vector.broadcast %7 : vector<8x1xf32> to vector<8x3xf32>
    %64 = arith.mulf %62, %63 : vector<8x3xf32>
    %65 = vector.broadcast %20 : vector<1x32xf32> to vector<8x32xf32>
    %66 = arith.addf %27, %65 : vector<8x32xf32>
    %cst_44 = arith.constant 0.000000e+00 : f32
    %67 = vector.broadcast %cst_44 : f32 to vector<8x32xf32>
    %68 = arith.maximumf %66, %67 : vector<8x32xf32>
    %cst_45 = arith.constant dense<0.000000e+00> : vector<8x1xf32>
    %69 = tpu.matmul %68, %13, %cst_45 {dimension_numbers = #tpu.dot_dimension_numbers<[1], [0], [0], [1], [0, 0, 1, 1], [], []>} : vector<8x32xf32>, vector<32x1xf32>, vector<8x1xf32> -> vector<8x1xf32>
    %70 = vector.broadcast %21 : vector<1x1xf32> to vector<8x1xf32>
    %71 = arith.addf %69, %70 : vector<8x1xf32>
    %cst_46 = arith.constant 1.000000e+00 : f32
    %72 = vector.broadcast %cst_46 : f32 to vector<8x3xf32>
    %73 = arith.mulf %64, %72 : vector<8x3xf32>
    %74 = vector.broadcast %71 : vector<8x1xf32> to vector<8x3xf32>
    %75 = arith.mulf %74, %3 : vector<8x3xf32>
    %76 = arith.addf %73, %75 : vector<8x3xf32>
    %77 = arith.addf %2, %76 : vector<8x3xf32>
    %cst_47 = arith.constant dense<0.000000e+00> : vector<8x32xf32>
    %78 = tpu.matmul %61, %11, %cst_47 {dimension_numbers = #tpu.dot_dimension_numbers<[1], [0], [0], [1], [0, 0, 1, 1], [], []>} : vector<8x32xf32>, vector<32x32xf32>, vector<8x32xf32> -> vector<8x32xf32>
    %79 = arith.addf %26, %78 : vector<8x32xf32>
    %80 = vector.broadcast %18 : vector<1x32xf32> to vector<8x32xf32>
    %81 = arith.addf %79, %80 : vector<8x32xf32>
    %cst_48 = arith.constant 0.000000e+00 : f32
    %82 = vector.broadcast %cst_48 : f32 to vector<8x32xf32>
    %83 = arith.maximumf %81, %82 : vector<8x32xf32>
    %cst_49 = arith.constant dense<0.000000e+00> : vector<8x32xf32>
    %84 = tpu.matmul %83, %12, %cst_49 {dimension_numbers = #tpu.dot_dimension_numbers<[1], [0], [0], [1], [0, 0, 1, 1], [], []>} : vector<8x32xf32>, vector<32x32xf32>, vector<8x32xf32> -> vector<8x32xf32>
    %85 = vector.broadcast %19 : vector<1x32xf32> to vector<8x32xf32>
    %86 = arith.addf %84, %85 : vector<8x32xf32>
    %87 = arith.addf %86, %1 : vector<8x32xf32>
    %88 = tpu.concatenate %87, %77, %76 in 1 : vector<8x32xf32>, vector<8x3xf32>, vector<8x3xf32> -> vector<8x38xf32>
    %c0_50 = arith.constant 0 : index
    %c0_51 = arith.constant 0 : index
    %89 = vector.load %arg14[%c0_50, %c0_51] : memref<8x38xf32, #tpu.memory_space<vmem>>, vector<8x38xf32>
    tpu.vector_store %arg14[%c0_50, %c0_51], %88 {strides = array<i32>} : memref<8x38xf32, #tpu.memory_space<vmem>>, vector<8x38xf32>,
    return
  }
  func.func @transform_0(%arg0: i32) -> (i32, i32) {
    %c0_i32 = arith.constant 0 : i32
    %c0_i32_0 = arith.constant 0 : i32
    return %arg0, %c0_i32 : i32, i32
  }
  func.func @transform_1(%arg0: i32) -> (i32, i32) {
    %c0_i32 = arith.constant 0 : i32
    %c0_i32_0 = arith.constant 0 : i32
    %c0_i32_1 = arith.constant 0 : i32
    return %c0_i32, %c0_i32_0 : i32, i32
  }
  func.func @transform_2(%arg0: i32) -> (i32, i32) {
    %c0_i32 = arith.constant 0 : i32
    %c0_i32_0 = arith.constant 0 : i32
    %c0_i32_1 = arith.constant 0 : i32
    return %c0_i32, %c0_i32_0 : i32, i32
  }
  func.func @transform_3(%arg0: i32) -> (i32, i32) {
    %c0_i32 = arith.constant 0 : i32
    %c0_i32_0 = arith.constant 0 : i32
    %c0_i32_1 = arith.constant 0 : i32
    return %c0_i32, %c0_i32_0 : i32, i32
  }
  func.func @transform_4(%arg0: i32) -> (i32, i32) {
    %c0_i32 = arith.constant 0 : i32
    %c0_i32_0 = arith.constant 0 : i32
    %c0_i32_1 = arith.constant 0 : i32
    return %c0_i32, %c0_i32_0 : i32, i32
  }
  func.func @transform_5(%arg0: i32) -> (i32, i32) {
    %c0_i32 = arith.constant 0 : i32
    %c0_i32_0 = arith.constant 0 : i32
    %c0_i32_1 = arith.constant 0 : i32
    return %c0_i32, %c0_i32_0 : i32, i32
  }
  func.func @transform_6(%arg0: i32) -> (i32, i32) {
    %c0_i32 = arith.constant 0 : i32
    %c0_i32_0 = arith.constant 0 : i32
    %c0_i32_1 = arith.constant 0 : i32
    return %c0_i32, %c0_i32_0 : i32, i32
  }
  func.func @transform_7(%arg0: i32) -> (i32, i32) {
    %c0_i32 = arith.constant 0 : i32
    %c0_i32_0 = arith.constant 0 : i32
    %c0_i32_1 = arith.constant 0 : i32
    return %c0_i32, %c0_i32_0 : i32, i32
  }
  func.func @transform_8(%arg0: i32) -> (i32, i32) {
    %c0_i32 = arith.constant 0 : i32
    %c0_i32_0 = arith.constant 0 : i32
    %c0_i32_1 = arith.constant 0 : i32
    return %c0_i32, %c0_i32_0 : i32, i32
  }
  func.func @transform_9(%arg0: i32) -> (i32, i32) {
    %c0_i32 = arith.constant 0 : i32
    %c0_i32_0 = arith.constant 0 : i32
    %c0_i32_1 = arith.constant 0 : i32
    return %c0_i32, %c0_i32_0 : i32, i32
  }
  func.func @transform_10(%arg0: i32) -> (i32, i32) {
    %c0_i32 = arith.constant 0 : i32
    %c0_i32_0 = arith.constant 0 : i32
    %c0_i32_1 = arith.constant 0 : i32
    return %c0_i32, %c0_i32_0 : i32, i32
  }
  func.func @transform_11(%arg0: i32) -> (i32, i32) {
    %c0_i32 = arith.constant 0 : i32
    %c0_i32_0 = arith.constant 0 : i32
    %c0_i32_1 = arith.constant 0 : i32
    return %c0_i32, %c0_i32_0 : i32, i32
  }
  func.func @transform_12(%arg0: i32) -> (i32, i32) {
    %c0_i32 = arith.constant 0 : i32
    %c0_i32_0 = arith.constant 0 : i32
    %c0_i32_1 = arith.constant 0 : i32
    return %c0_i32, %c0_i32_0 : i32, i32
  }
  func.func @transform_13(%arg0: i32) -> (i32, i32) {
    %c0_i32 = arith.constant 0 : i32
    %c0_i32_0 = arith.constant 0 : i32
    return %arg0, %c0_i32 : i32, i32
  }
}

</mosaic_0001>

<bundles_post_ra>
// kernel: tpu_custom_call.1
= control target key start
LH: loop header
LB: loop body
LE: loop exit
PB: predicated region body
PF: predicated region fallthrough
CT: control target
= control target key end

     0   :  { %s2840_s0 = inlined_call_operand.vmem [shape: f32[16,38], index: 0, kind: input, shape index: {}]   ;;  %s2841_s1 = inlined_call_operand.vmem [shape: f32[56,16], index: 1, kind: input, shape index: {}]   ;;  %s2842_s2 = inlined_call_operand.vmem [shape: f32[56,8], index: 2, kind: input, shape index: {}]   ;;  %s2843_s3 = inlined_call_operand.vmem [shape: f32[8,56], index: 3, kind: input, shape index: {}]   ;;  %s2844_s4 = inlined_call_operand.vmem [shape: f32[8,1], index: 4, kind: input, shape index: {}]   ;;  %s2845_s5 = inlined_call_operand.vmem [shape: f32[32,128], index: 5, kind: input, shape index: {}]   ;;  %s2846_s6 = inlined_call_operand.vmem [shape: f32[32,32], index: 6, kind: input, shape index: {}]   ;;  %s2847_s7 = inlined_call_operand.vmem [shape: f32[32,32], index: 7, kind: input, shape index: {}]   ;;  %s2848_s8 = inlined_call_operand.vmem [shape: f32[32,1], index: 8, kind: input, shape index: {}]   ;;  %s2849_s9 = inlined_call_operand.vmem [shape: f32[32,32], index: 9, kind: input, shape index: {}]   ;;  %s2850_s10 = inlined_call_operand.vmem [shape: f32[32,32], index: 10, kind: input, shape index: {}]   ;;  %s2851_s11 = inlined_call_operand.vmem [shape: f32[32,1], index: 11, kind: input, shape index: {}]   ;;  %s2852_s12 = inlined_call_operand.vmem [shape: f32[8,32], index: 12, kind: input, shape index: {}]   ;;  %s2853_s13 = inlined_call_operand.hbm [shape: f32[16,38], index: 13, kind: output, shape index: {}]  }
   0x1   :  { %2854 = sst [smem:[#allocation6_spill]] %s2840_s0 }
   0x2   :  { %2855 = sst [smem:[#allocation7_spill]] %s2841_s1 }
   0x3   :  { %18 = vsyncpa [#allocation3], 0 }
   0x4   :  { %20 = vsyncpa [#allocation3 + $0x1], 0  ;;  %s2308_s25 = smov 0   ;;  %s2310_s26 = smov 0  }
   0x5   :  { %s2312_s27 = smov 0   ;;  %s2314_s28 = smov 0  }
   0x6 LB: > { %s2329_s29 = sadd.s32 4294967295, %s2227_s28   ;;  %s1779_s30 = sadd.s32 4294967294, %s2227_s28   ;;  %s2227_s28 = sphi %s2314_s28, %s2865_s28   ;;  %s2223_s27 = sphi %s2312_s27, %s2864_s27   ;;  %s2219_s26 = sphi %s2310_s26, %s2863_s26   ;;  %s2215_s25 = sphi %s2308_s25, %s2862_s25  }
   0x7   : > { %s2333_s14 = sadd.s32 1, %s2227_s28   ;;  %s311_s15 = sadd.s32 1, %s2223_s27 }
   0x8   : > { %s308_s16 = ssub.s32 %s2227_s28, %s2333_s14  ;;  %p321_p0 = scmp.ne.s32.totalorder %s2223_s27, %s2219_s26 }
   0x9   : > { %p309_p1 = scmp.eq.s32.totalorder %s308_s16, 0  ;;  %p322_p2 = scmp.eq.s32.totalorder %s2329_s29, 1 }
   0xa   : > { %p327_p3 = scmp.ne.s32.totalorder %s2219_s26, %s2215_s25  ;;  %p328_p4 = scmp.eq.s32.totalorder %s1779_s30, 1 }
   0xb   : > { %s2344_s17 = scalar_select %p309_p1, %s2223_s27, %s311_s15  }
   0xc   : > { %p2346_p5 = por %p322_p2, %p321_p0  ;;  %p2350_p6 = por %p328_p4, %p327_p3 }
   0xd   : > { %2856 = sst [smem:[#allocation5_spill]] %s2344_s17  ;;  %p1782_p7 = scmp.ge.s32.totalorder %s2227_s28, 1 }
   0xe   : > { %p389_p8 = scmp.lt.s32.totalorder %s2227_s28, 3 }
  0x10   : > { %p390_p9 = pnand %p1782_p7, %p389_p8 }
  0x11   : > { %p432_p10 = scmp.lt.s32.totalorder (!%p390_p9), %s2329_s29, 1  ;;  %s2859_s0 = sld [smem:[#allocation6_spill]] (!%p390_p9) }
  0x12   : > { %393 = sbr.rel (%p390_p9) target bundleno = 2246 (0x8c6), region = 72  ;;  %s2231_s30 = smov (!%p390_p9), 96  }
  0x13   : > { %s2860_s1 = sld [smem:[#allocation7_spill]] (!%p390_p9)  ;;  %s2233_s20 = smov (!%p390_p9), 32  }
  0x14   : > { %s2235_s21 = smov (!%p390_p9), 125   ;;  %s2236_s23 = smov (!%p390_p9), 3  }
  0x17   : > { %v488_v0 = vld [vmem:[%s2845_s5 + $0x18] sm:$0xff]  ;;  %v2229_v1 = vmov 0.0   ;;  %v487_v2 = vld [vmem:[%s2845_s5 + $0x10] sm:$0xff]  ;;  %vm2230_vm0 = vmmov 0   ;;  %s433_s24 = scalar_select %p432_p10, %s2329_s29, 1  ;;  %v486_v3 = vld [vmem:[%s2845_s5 + $0x8] sm:$0xff] }
  0x18   : > { %1922 = vmatprep.subr.mxu0 %v2229_v1  ;;  %1930 = vmatprep.mubr.msk.f32.mxu0 %vm2230_vm0, %v2229_v1  ;;  %v485_v4 = vld [vmem:[%s2845_s5] sm:$0xff]  ;;  %vm489_vm1 = vcmask 261120   ;;  %vm570_vm2 = vcmask 64512   ;;  %v445_v8 = vld [vmem:[%s2842_s2 + $0x8] sm:$0xff]  ;;  %v446_v9 = vld [vmem:[%s2842_s2 + $0x10] sm:$0xff]  ;;  %vm699_vm3 = vcmask 23552  }
  0x19   : > { %1923 = vmatpush3.msra.mxu0 %v488_v0  ;;  %1933 = vmatprep.subr.mxu1 %v2229_v1  ;;  %s1784_s16 = sshll.u32 %s433_s24, 3  ;;  %v444_v6 = vld [vmem:[%s2842_s2] sm:$0xff]  ;;  %v447_v10 = vld [vmem:[%s2842_s2 + $0x18] sm:$0xff]  ;;  %v449_v12 = vld [vmem:[%s2842_s2 + $0x28] sm:$0xff]  ;;  %vm732_vm4 = vcmask 130048   ;;  %vm1348_vm5 = vcmask 457728  }
  0x1a   : > { %1924 = vmatprep.subr.mxu0 %v2229_v1  ;;  %1935 = vmatprep.mubr.msk.f32.mxu1 %vm2230_vm0, %v2229_v1  ;;  %s435_s17 = scalar_lea.vmem %s2859_s0, %s1784_s16  ;;  %v448_v11 = vld [vmem:[%s2842_s2 + $0x20] sm:$0xff]  ;;  %v450_v13 = vld [vmem:[%s2842_s2 + $0x30] sm:$0xff]  ;;  %v456_v16 = vld [vmem:[%s2846_s6 + $0x18] sm:$0xff]  ;;  %s429_s24 = sand.u32 1, %s2219_s26   ;;  %vm1702_vm6 = vcmask 285696   ;;  %vm1704_vm7 = vcmask 310272  }
  0x1b   : > { %1925 = vmatpush3.msra.mxu0 %v487_v2  ;;  %v2381_v5 = vld [vmem:[%s435_s17] sm:$0xff]  ;;  %v438_v25 = vld [vmem:[%s2860_s1 + $0x8] sm:$0xff]  ;;  %v439_v30 = vld [vmem:[%s2860_s1 + $0x10] sm:$0xff]  ;;  %s2234_s17 = smov 64   ;;  %s1783_s15 = sshll.u32 %s429_s24, 3 }
  0x1c   : > { %1926 = vmatprep.subr.mxu0 %v2229_v1  ;;  %567 = vrot.lane.b32.xlu0 %v2381_v5, %s2231_s30  ;;  %v437_v20 = vld [vmem:[%s2860_s1] sm:$0xff]  ;;  %v440_v35 = vld [vmem:[%s2860_s1 + $0x18] sm:$0xff]  ;;  %v455_v37 = vld [vmem:[%s2846_s6 + $0x10] sm:$0xff]  ;;  %s2237_s16 = smov [#allocation2]  }
  0x1d   : > { %1927 = vmatpush3.msra.mxu0 %v486_v3  ;;  %v441_v41 = vld [vmem:[%s2860_s1 + $0x20] sm:$0xff]  ;;  %v442_v46 = vld [vmem:[%s2860_s1 + $0x28] sm:$0xff]  ;;  %v443_v51 = vld [vmem:[%s2860_s1 + $0x30] sm:$0xff]  ;;  %s2171_s0 = sshll.u32 %s2237_s16, 4  ;;  %s2172_s0 = int_to_ptr.vmem [resolvable:$false] %s2171_s0 }
  0x1e   : > { %1928 = vmatprep.subr.mxu0 %v2229_v1  ;;  %v454_v54 = vld [vmem:[%s2846_s6 + $0x8] sm:$0xff]  ;;  %v453_v55 = vld [vmem:[%s2846_s6] sm:$0xff]  ;;  %v460_v56 = vld [vmem:[%s2847_s7 + $0x18] sm:$0xff]  ;;  %s2173_s1 = scalar_lea.vmem %s2172_s0, 256 }
  0x1f   : > { %1929 = vmatpush3.msra.mxu0 %v485_v4  ;;  %v459_v57 = vld [vmem:[%s2847_s7 + $0x10] sm:$0xff]  ;;  %v1793_v59 = vld [vmem:[%s2852_s12] ss:$0 sm:$0xff]  ;;  %v1801_v62 = vld [vmem:[%s2852_s12 + $0x1] ss:$0 sm:$0xff] }
  0x20   : > { %1931 = vmatmul.mubr.msk.f32.vlgmr.msra.gmra.mxu0 %vm489_vm1, %v2381_v5  ;;  %1956 = vmatprep.subr.mxu0 %v2229_v1 }
  0x21   : > { %1960 = vmatprep.mubr.msk.f32.mxu0 %vm2230_vm0, %v2229_v1 }
  0x8e   : > { %v568_v7 = vpop.permute.xlu0 %567 }
  0x8f   : > { %1934 = vmatpush3.msra.mxu1 %v568_v7 }
  0x90   : > { %1936 = vmatmul.mubr.msk.f32.vlgmr.msra.gmra.mxu1 %vm570_vm2, %v444_v6  ;;  %1981 = vmatprep.subr.mxu1 %v2229_v1 }
  0x91   : > { %1938 = vmatprep.mubr.msk.f32.mxu1 %vm2230_vm0, %v2229_v1  ;;  %1982 = vmatpush3.msra.mxu1 %v456_v16 }
  0x92   : > { %1983 = vmatprep.subr.mxu1 %v2229_v1 }
  0x93   : > { %1984 = vmatpush3.msra.mxu1 %v455_v37 }
  0x94   : > { %1939 = vmatmul.mubr.msk.f32.gmra.mxu1 %vm570_vm2, %v445_v8  ;;  %1985 = vmatprep.subr.mxu1 %v2229_v1 }
  0x95   : > { %1941 = vmatprep.mubr.msk.f32.mxu1 %vm2230_vm0, %v2229_v1  ;;  %1986 = vmatpush3.msra.mxu1 %v454_v54 }
  0x96   : > { %1987 = vmatprep.subr.mxu1 %v2229_v1 }
  0x97   : > { %1988 = vmatpush3.msra.mxu1 %v453_v55  ;;  %v458_v55 = vld [vmem:[%s2847_s7 + $0x8] sm:$0xff] }
  0x98   : > { %1942 = vmatmul.mubr.msk.f32.gmra.mxu1 %vm570_vm2, %v446_v9  ;;  %2039 = vmatprep.subr.mxu1 %v2229_v1 }
  0x99   : > { %1944 = vmatprep.mubr.msk.f32.mxu1 %vm2230_vm0, %v2229_v1 }
  0x9c   : > { %1945 = vmatmul.mubr.msk.f32.gmra.mxu1 %vm570_vm2, %v447_v10 }
  0x9d   : > { %1947 = vmatprep.mubr.msk.f32.mxu1 %vm2230_vm0, %v2229_v1 }
  0xa0   : > { %1948 = vmatmul.mubr.msk.f32.gmra.mxu1 %vm570_vm2, %v448_v11 }
  0xa1   : > { %1950 = vmatprep.mubr.msk.f32.mxu1 %vm2230_vm0, %v2229_v1 }
  0xa4   : > { %1951 = vmatmul.mubr.msk.f32.gmra.mxu1 %vm570_vm2, %v449_v12 }
  0xa5   : > { %1953 = vmatprep.mubr.msk.f32.mxu1 %vm2230_vm0, %v2229_v1 }
  0xa8   : > { %1954 = vmatmul.mubr.msk.f32.gmra.mxu1 %vm570_vm2, %v450_v13 }
  0xa9   : > { %1989 = vmatprep.mubr.msk.f32.mxu1 %vm2230_vm0, %v2229_v1 }
  0xe0   : > { %v2434_v14 = vpop.f32.mrf.mxu0 }
  0xe1   : > { %564 = vrot.lane.b32.xlu0 %v2434_v14, %s2231_s30 }
  0xe2   : > { %v1932_v15 = vpop.f32.mrf.mxu0 }
 0x150   : > { %v2442_v17 = vpop.f32.mrf.mxu1 }
 0x151   : > { %v692_v19 = vmul.f32 %v2442_v17, %v2442_v17 }
 0x152   : > { %v1937_v21 = vpop.f32.mrf.mxu1 }
 0x153   : > { %v565_v18 = vpop.permute.xlu0 %564  ;;  %v700_v22 = vsel %vm699_vm3, %v692_v19, 0.0 }
 0x154   : > { %1957 = vmatpush3.msra.mxu0 %v565_v18  ;;  %v2452_v23 = vpop.f32.mrf.mxu1  ;;  %701 = vadd.xlane.f32.xlu1 %v700_v22 }
 0x155   : > { %1958 = vmatprep.subr.mxu0 %v2229_v1  ;;  %v693_v24 = vmul.f32 %v2452_v23, %v2452_v23 }
 0x156   : > { %1959 = vmatpush3.msra.mxu0 %v2434_v14  ;;  %v1940_v26 = vpop.f32.mrf.mxu1 }
 0x157   : > { %1961 = vmatmul.mubr.msk.f32.vlgmr.msra.gmra.mxu0 %vm732_vm4, %v437_v20  ;;  %2010 = vmatprep.subr.mxu0 %v2229_v1  ;;  %v703_v27 = vsel %vm699_vm3, %v693_v24, 0.0 }
 0x158   : > { %1963 = vmatprep.mubr.msk.f32.mxu0 %vm2230_vm0, %v2229_v1  ;;  %v2464_v28 = vpop.f32.mrf.mxu1  ;;  %704 = vadd.xlane.f32.xlu1 %v703_v27 }
 0x159   : > { %v694_v29 = vmul.f32 %v2464_v28, %v2464_v28  ;;  %2011 = vmatpush3.msra.mxu0 %v460_v56  ;;  %v457_v56 = vld [vmem:[%s2847_s7] sm:$0xff] }
 0x15a   : > { %v1943_v31 = vpop.f32.mrf.mxu1  ;;  %2012 = vmatprep.subr.mxu0 %v2229_v1 }
 0x15b   : > { %1964 = vmatmul.mubr.msk.f32.gmra.mxu0 %vm732_vm4, %v438_v25  ;;  %v706_v32 = vsel %vm699_vm3, %v694_v29, 0.0 }
 0x15c   : > { %1966 = vmatprep.mubr.msk.f32.mxu0 %vm2230_vm0, %v2229_v1  ;;  %v2475_v33 = vpop.f32.mrf.mxu1  ;;  %707 = vadd.xlane.f32.xlu0 %v706_v32 }
 0x15d   : > { %v695_v34 = vmul.f32 %v2475_v33, %v2475_v33  ;;  %2013 = vmatpush3.msra.mxu0 %v459_v57  ;;  %v464_v57 = vld [vmem:[%s2848_s8 + $0x18] sm:$0xff] }
 0x15e   : > { %v1946_v36 = vpop.f32.mrf.mxu1  ;;  %2014 = vmatprep.subr.mxu0 %v2229_v1 }
 0x15f   : > { %1967 = vmatmul.mubr.msk.f32.gmra.mxu0 %vm732_vm4, %v439_v30  ;;  %v709_v38 = vsel %vm699_vm3, %v695_v34, 0.0 }
 0x160   : > { %1969 = vmatprep.mubr.msk.f32.mxu0 %vm2230_vm0, %v2229_v1  ;;  %v2489_v39 = vpop.f32.mrf.mxu1  ;;  %710 = vadd.xlane.f32.xlu1 %v709_v38 }
 0x161   : > { %v696_v40 = vmul.f32 %v2489_v39, %v2489_v39  ;;  %2015 = vmatpush3.msra.mxu0 %v458_v55 }
 0x162   : > { %v1949_v42 = vpop.f32.mrf.mxu1  ;;  %2016 = vmatprep.subr.mxu0 %v2229_v1 }
 0x163   : > { %1970 = vmatmul.mubr.msk.f32.gmra.mxu0 %vm732_vm4, %v440_v35  ;;  %v712_v43 = vsel %vm699_vm3, %v696_v40, 0.0 }
 0x164   : > { %1972 = vmatprep.mubr.msk.f32.mxu0 %vm2230_vm0, %v2229_v1  ;;  %v2501_v44 = vpop.f32.mrf.mxu1  ;;  %713 = vadd.xlane.f32.xlu1 %v712_v43 }
 0x165   : > { %v697_v45 = vmul.f32 %v2501_v44, %v2501_v44  ;;  %2017 = vmatpush3.msra.mxu0 %v457_v56 }
 0x166   : > { %v1952_v47 = vpop.f32.mrf.mxu1  ;;  %2068 = vmatprep.subr.mxu0 %v2229_v1 }
 0x167   : > { %1973 = vmatmul.mubr.msk.f32.gmra.mxu0 %vm732_vm4, %v441_v41  ;;  %v715_v48 = vsel %vm699_vm3, %v697_v45, 0.0 }
 0x168   : > { %1975 = vmatprep.mubr.msk.f32.mxu0 %vm2230_vm0, %v2229_v1  ;;  %v2512_v49 = vpop.f32.mrf.mxu1  ;;  %716 = vadd.xlane.f32.xlu1 %v715_v48 }
 0x169   : > { %v698_v50 = vmul.f32 %v2512_v49, %v2512_v49 }
 0x16a   : > { %v1955_v52 = vpop.f32.mrf.mxu1 }
 0x16b   : > { %1976 = vmatmul.mubr.msk.f32.gmra.mxu0 %vm732_vm4, %v442_v46  ;;  %v718_v53 = vsel %vm699_vm3, %v698_v50, 0.0 }
 0x16c   : > { %1978 = vmatprep.mubr.msk.f32.mxu0 %vm2230_vm0, %v2229_v1  ;;  %719 = vadd.xlane.f32.xlu1 %v718_v53 }
 0x16f   : > { %1979 = vmatmul.mubr.msk.f32.gmra.mxu0 %vm732_vm4, %v443_v51 }
 0x170   : > { %2018 = vmatprep.mubr.msk.f32.mxu0 %vm2230_vm0, %v2229_v1 }
 0x1dd   : > { %v702_v58 = vpop.xlane.xlu1 %701 }
 0x1de   : > { %v725_v61 = vmul.f32 %v1793_v59, %v702_v58  ;;  %v463_v58 = vld [vmem:[%s2848_s8 + $0x10] sm:$0xff] }
 0x1e1   : > { %v705_v60 = vpop.xlane.xlu1 %704 }
 0x1e2   : > { %v726_v3 = vmul.f32 %v1793_v59, %v705_v60 }
 0x1e5   : > { %v708_v6 = vpop.xlane.xlu0 %707 }
 0x1e6   : > { %v727_v11 = vmul.f32 %v1793_v59, %v708_v6 }
 0x1e9   : > { %v711_v0 = vpop.xlane.xlu1 %710 }
 0x1ea   : > { %v728_v20 = vmul.f32 %v1793_v59, %v711_v0 }
 0x1ed   : > { %v714_v13 = vpop.xlane.xlu1 %713 }
 0x1ee   : > { %v729_v29 = vmul.f32 %v1793_v59, %v714_v13 }
 0x1f1   : > { %v717_v25 = vpop.xlane.xlu1 %716 }
 0x1f2   : > { %v730_v36 = vmul.f32 %v1793_v59, %v717_v25 }
 0x1f5   : > { %v720_v38 = vpop.xlane.xlu1 %719 }
 0x1f6   : > { %v731_v45 = vmul.f32 %v1793_v59, %v720_v38  ;;  %v1802_v59 = vld [vmem:[%s2852_s12 + $0x2] ss:$0 sm:$0xff] }
 0x217   : > { %v820_v63 = vpop.f32.mrf.mxu0 }
 0x218   : > { %v821_v2 = vadd.f32 %v820_v63, %v725_v61 }
 0x219   : > { %v1962_v4 = vpop.f32.mrf.mxu0 }
 0x21a   : > { %v858_v7 = vadd.f32 %v1801_v62, %v821_v2 }
 0x21b   : > { %v825_v8 = vpop.f32.mrf.mxu0 }
 0x21c   : > { %v865_v9 = vmax.f32 %v858_v7, 0.0  ;;  %v826_v10 = vadd.f32 %v825_v8, %v726_v3 }
 0x21d   : > { %v1965_v12 = vpop.f32.mrf.mxu0 }
 0x21e   : > { %v859_v15 = vadd.f32 %v1801_v62, %v826_v10  ;;  %1990 = vmatmul.mubr.msk.f32.vlgmr.msra.gmra.mxu1 %vm489_vm1, %v865_v9 }
 0x21f   : > { %v830_v16 = vpop.f32.mrf.mxu0  ;;  %1992 = vmatprep.mubr.msk.f32.mxu1 %vm2230_vm0, %v2229_v1  ;;  %2040 = vmatpush3.msra.mxu1 %v464_v57 }
 0x220   : > { %v866_v18 = vmax.f32 %v859_v15, 0.0  ;;  %v831_v19 = vadd.f32 %v830_v16, %v727_v11  ;;  %2041 = vmatprep.subr.mxu1 %v2229_v1 }
 0x221   : > { %v1968_v21 = vpop.f32.mrf.mxu0  ;;  %2042 = vmatpush3.msra.mxu1 %v463_v58 }
 0x222   : > { %v860_v22 = vadd.f32 %v1801_v62, %v831_v19  ;;  %1993 = vmatmul.mubr.msk.f32.gmra.mxu1 %vm489_vm1, %v866_v18  ;;  %2043 = vmatprep.subr.mxu1 %v2229_v1 }
 0x223   : > { %v835_v24 = vpop.f32.mrf.mxu0  ;;  %1995 = vmatprep.mubr.msk.f32.mxu1 %vm2230_vm0, %v2229_v1 }
 0x224   : > { %v867_v26 = vmax.f32 %v860_v22, 0.0  ;;  %v836_v27 = vadd.f32 %v835_v24, %v728_v20 }
 0x225   : > { %v1971_v30 = vpop.f32.mrf.mxu0 }
 0x226   : > { %v861_v31 = vadd.f32 %v1801_v62, %v836_v27  ;;  %1996 = vmatmul.mubr.msk.f32.gmra.mxu1 %vm489_vm1, %v867_v26  ;;  %v462_v30 = vld [vmem:[%s2848_s8 + $0x8] sm:$0xff] }
 0x227   : > { %v840_v32 = vpop.f32.mrf.mxu0  ;;  %1998 = vmatprep.mubr.msk.f32.mxu1 %vm2230_vm0, %v2229_v1  ;;  %2044 = vmatpush3.msra.mxu1 %v462_v30 }
 0x228   : > { %v868_v34 = vmax.f32 %v861_v31, 0.0  ;;  %v841_v35 = vadd.f32 %v840_v32, %v729_v29  ;;  %2045 = vmatprep.subr.mxu1 %v2229_v1  ;;  %v461_v31 = vld [vmem:[%s2848_s8] sm:$0xff] }
 0x229   : > { %v1974_v37 = vpop.f32.mrf.mxu0  ;;  %2046 = vmatpush3.msra.mxu1 %v461_v31  ;;  %v1810_v32 = vld [vmem:[%s2852_s12 + $0x3] ss:$0 sm:$0xff] }
 0x22a   : > { %v862_v40 = vadd.f32 %v1801_v62, %v841_v35  ;;  %1999 = vmatmul.mubr.msk.f32.gmra.mxu1 %vm489_vm1, %v868_v34  ;;  %2107 = vmatprep.subr.mxu1 %v2229_v1 }
 0x22b   : > { %v845_v41 = vpop.f32.mrf.mxu0  ;;  %2001 = vmatprep.mubr.msk.f32.mxu1 %vm2230_vm0, %v2229_v1 }
 0x22c   : > { %v869_v42 = vmax.f32 %v862_v40, 0.0  ;;  %v846_v43 = vadd.f32 %v845_v41, %v730_v36 }
 0x22d   : > { %v1977_v46 = vpop.f32.mrf.mxu0 }
 0x22e   : > { %v863_v47 = vadd.f32 %v1801_v62, %v846_v43  ;;  %2002 = vmatmul.mubr.msk.f32.gmra.mxu1 %vm489_vm1, %v869_v42 }
 0x22f   : > { %v850_v48 = vpop.f32.mrf.mxu0  ;;  %2004 = vmatprep.mubr.msk.f32.mxu1 %vm2230_vm0, %v2229_v1 }
 0x230   : > { %v870_v50 = vmax.f32 %v863_v47, 0.0  ;;  %v851_v51 = vadd.f32 %v850_v48, %v731_v45 }
 0x231   : > { %v1980_v52 = vpop.f32.mrf.mxu0 }
 0x232   : > { %v864_v53 = vadd.f32 %v1801_v62, %v851_v51  ;;  %2005 = vmatmul.mubr.msk.f32.gmra.mxu1 %vm489_vm1, %v870_v50 }
 0x233   : > { %2007 = vmatprep.mubr.msk.f32.mxu1 %vm2230_vm0, %v2229_v1 }
 0x234   : > { %v871_v54 = vmax.f32 %v864_v53, 0.0 }
 0x236   : > { %2008 = vmatmul.mubr.msk.f32.gmra.mxu1 %vm489_vm1, %v871_v54 }
 0x237   : > { %2047 = vmatprep.mubr.msk.f32.mxu1 %vm2230_vm0, %v2229_v1 }
 0x2de   : > { %v963_v60 = vpop.f32.mrf.mxu1 }
 0x2df   : > { %v2588_v61 = vadd.f32 %v1802_v59, %v963_v60 }
 0x2e0   : > { %v1991_v62 = vpop.f32.mrf.mxu1 }
 0x2e1   : > { %v997_v63 = vmax.f32 %v2588_v61, 0.0 }
 0x2e2   : > { %v968_v0 = vpop.f32.mrf.mxu1 }
 0x2e3   : > { %v2591_v2 = vadd.f32 %v1802_v59, %v968_v0  ;;  %2019 = vmatmul.mubr.msk.f32.vlgmr.msra.gmra.mxu0 %vm489_vm1, %v997_v63 }
 0x2e4   : > { %v1994_v3 = vpop.f32.mrf.mxu1  ;;  %2021 = vmatprep.mubr.msk.f32.mxu0 %vm2230_vm0, %v2229_v1 }
 0x2e5   : > { %v998_v4 = vmax.f32 %v2591_v2, 0.0 }
 0x2e6   : > { %v973_v6 = vpop.f32.mrf.mxu1 }
 0x2e7   : > { %v2599_v7 = vadd.f32 %v1802_v59, %v973_v6  ;;  %2022 = vmatmul.mubr.msk.f32.gmra.mxu0 %vm489_vm1, %v998_v4 }
 0x2e8   : > { %v1997_v8 = vpop.f32.mrf.mxu1  ;;  %2024 = vmatprep.mubr.msk.f32.mxu0 %vm2230_vm0, %v2229_v1 }
 0x2e9   : > { %v999_v9 = vmax.f32 %v2599_v7, 0.0  ;;  %v2232_v8 = vmov 0  }
 0x2ea   : > { %v978_v10 = vpop.f32.mrf.mxu1  ;;  %2166 = vset.pattern.permute.xlu1 %v2232_v8  ;;  %2165 = vset.pattern.permute.xlu0 %v2232_v8 }
 0x2eb   : > { %v2607_v11 = vadd.f32 %v1802_v59, %v978_v10  ;;  %2025 = vmatmul.mubr.msk.f32.gmra.mxu0 %vm489_vm1, %v999_v9 }
 0x2ec   : > { %v2000_v12 = vpop.f32.mrf.mxu1  ;;  %2027 = vmatprep.mubr.msk.f32.mxu0 %vm2230_vm0, %v2229_v1 }
 0x2ed   : > { %v1000_v13 = vmax.f32 %v2607_v11, 0.0 }
 0x2ee   : > { %v983_v15 = vpop.f32.mrf.mxu1 }
 0x2ef   : > { %v2615_v16 = vadd.f32 %v1802_v59, %v983_v15  ;;  %2028 = vmatmul.mubr.msk.f32.gmra.mxu0 %vm489_vm1, %v1000_v13 }
 0x2f0   : > { %v2003_v18 = vpop.f32.mrf.mxu1  ;;  %2030 = vmatprep.mubr.msk.f32.mxu0 %vm2230_vm0, %v2229_v1 }
 0x2f1   : > { %v1001_v19 = vmax.f32 %v2615_v16, 0.0 }
 0x2f2   : > { %v988_v20 = vpop.f32.mrf.mxu1 }
 0x2f3   : > { %v2623_v21 = vadd.f32 %v1802_v59, %v988_v20  ;;  %2031 = vmatmul.mubr.msk.f32.gmra.mxu0 %vm489_vm1, %v1001_v19 }
 0x2f4   : > { %v2006_v22 = vpop.f32.mrf.mxu1  ;;  %2033 = vmatprep.mubr.msk.f32.mxu0 %vm2230_vm0, %v2229_v1 }
 0x2f5   : > { %v1002_v24 = vmax.f32 %v2623_v21, 0.0 }
 0x2f6   : > { %v993_v25 = vpop.f32.mrf.mxu1 }
 0x2f7   : > { %v2631_v26 = vadd.f32 %v1802_v59, %v993_v25  ;;  %2034 = vmatmul.mubr.msk.f32.gmra.mxu0 %vm489_vm1, %v1002_v24 }
 0x2f8   : > { %v2009_v27 = vpop.f32.mrf.mxu1  ;;  %2036 = vmatprep.mubr.msk.f32.mxu0 %vm2230_vm0, %v2229_v1 }
 0x2f9   : > { %v1003_v29 = vmax.f32 %v2631_v26, 0.0 }
 0x2fb   : > { %2037 = vmatmul.mubr.msk.f32.gmra.mxu0 %vm489_vm1, %v1003_v29 }
 0x2fc   : > { %2082 = vmatprep.mubr.msk.f32.mxu0 %vm2230_vm0, %v2229_v1 }
 0x3a3   : > { %v1095_v34 = vpop.f32.mrf.mxu0 }
 0x3a4   : > { %v1096_v35 = vadd.f32 %v1810_v32, %v1095_v34 }
 0x3a5   : > { %v2020_v36 = vpop.f32.mrf.mxu0 }
 0x3a6   : > { %v1129_v37 = vmax.f32 %v1096_v35, 0.0 }
 0x3a7   : > { %v1100_v38 = vpop.f32.mrf.mxu0 }
 0x3a8   : > { %v1101_v40 = vadd.f32 %v1810_v32, %v1100_v38  ;;  %2048 = vmatmul.mubr.msk.f32.vlgmr.msra.gmra.mxu1 %vm489_vm1, %v1129_v37 }
 0x3a9   : > { %v2023_v41 = vpop.f32.mrf.mxu0  ;;  %2050 = vmatprep.mubr.msk.f32.mxu1 %vm2230_vm0, %v2229_v1 }
 0x3aa   : > { %v1130_v42 = vmax.f32 %v1101_v40, 0.0 }
 0x3ab   : > { %v1105_v43 = vpop.f32.mrf.mxu0 }
 0x3ac   : > { %v1106_v45 = vadd.f32 %v1810_v32, %v1105_v43  ;;  %2051 = vmatmul.mubr.msk.f32.gmra.mxu1 %vm489_vm1, %v1130_v42 }
 0x3ad   : > { %v2026_v46 = vpop.f32.mrf.mxu0  ;;  %2053 = vmatprep.mubr.msk.f32.mxu1 %vm2230_vm0, %v2229_v1 }
 0x3ae   : > { %v1131_v47 = vmax.f32 %v1106_v45, 0.0 }
 0x3af   : > { %v1110_v48 = vpop.f32.mrf.mxu0 }
 0x3b0   : > { %v1111_v50 = vadd.f32 %v1810_v32, %v1110_v48  ;;  %2054 = vmatmul.mubr.msk.f32.gmra.mxu1 %vm489_vm1, %v1131_v47 }
 0x3b1   : > { %v2029_v51 = vpop.f32.mrf.mxu0  ;;  %2056 = vmatprep.mubr.msk.f32.mxu1 %vm2230_vm0, %v2229_v1 }
 0x3b2   : > { %v1132_v52 = vmax.f32 %v1111_v50, 0.0 }
 0x3b3   : > { %v1115_v53 = vpop.f32.mrf.mxu0 }
 0x3b4   : > { %v1116_v54 = vadd.f32 %v1810_v32, %v1115_v53  ;;  %2057 = vmatmul.mubr.msk.f32.gmra.mxu1 %vm489_vm1, %v1132_v52 }
 0x3b5   : > { %v2032_v55 = vpop.f32.mrf.mxu0  ;;  %2059 = vmatprep.mubr.msk.f32.mxu1 %vm2230_vm0, %v2229_v1 }
 0x3b6   : > { %v1133_v56 = vmax.f32 %v1116_v54, 0.0 }
 0x3b7   : > { %v1120_v57 = vpop.f32.mrf.mxu0 }
 0x3b8   : > { %v1121_v58 = vadd.f32 %v1810_v32, %v1120_v57  ;;  %2060 = vmatmul.mubr.msk.f32.gmra.mxu1 %vm489_vm1, %v1133_v56 }
 0x3b9   : > { %v2035_v59 = vpop.f32.mrf.mxu0  ;;  %2062 = vmatprep.mubr.msk.f32.mxu1 %vm2230_vm0, %v2229_v1 }
 0x3ba   : > { %v1134_v60 = vmax.f32 %v1121_v58, 0.0 }
 0x3bb   : > { %v1125_v62 = vpop.f32.mrf.mxu0 }
 0x3bc   : > { %v1126_v0 = vadd.f32 %v1810_v32, %v1125_v62  ;;  %2063 = vmatmul.mubr.msk.f32.gmra.mxu1 %vm489_vm1, %v1134_v60 }
 0x3bd   : > { %v2038_v3 = vpop.f32.mrf.mxu0  ;;  %2065 = vmatprep.mubr.msk.f32.mxu1 %vm2230_vm0, %v2229_v1 }
 0x3be   : > { %v1135_v6 = vmax.f32 %v1126_v0, 0.0  ;;  %v473_v0 = vld [vmem:[%s2851_s11] sm:$0xff] }
 0x3bf   : > { %v1837_v3 = vld [vmem:[%s2852_s12 + $0x4] ss:$0 sm:$0xff] }
 0x3c0   : > { %2066 = vmatmul.mubr.msk.f32.gmra.mxu1 %vm489_vm1, %v1135_v6  ;;  %v468_v6 = vld [vmem:[%s2849_s9 + $0x18] sm:$0xff] }
 0x3c1   : > { %2115 = vmatprep.mubr.msk.f32.mxu1 %vm2230_vm0, %v2229_v1 }
 0x468   : > { %v1223_v10 = vpop.f32.mrf.mxu1 }
 0x46a   : > { %v2049_v12 = vpop.f32.mrf.mxu1 }
 0x46b   : > { %v466_v12 = vld [vmem:[%s2849_s9 + $0x8] sm:$0xff] }
 0x46c   : > { %v1228_v15 = vpop.f32.mrf.mxu1 }
 0x46e   : > { %v2052_v18 = vpop.f32.mrf.mxu1 }
 0x470   : > { %v1233_v20 = vpop.f32.mrf.mxu1 }
 0x472   : > { %v2055_v22 = vpop.f32.mrf.mxu1 }
 0x473   : > { %v1834_v22 = vld [vmem:[%s2852_s12 + $0x7] ss:$0 sm:$0xff] }
 0x474   : > { %v1238_v25 = vpop.f32.mrf.mxu1 }
 0x476   : > { %v2058_v27 = vpop.f32.mrf.mxu1 }
 0x478   : > { %v1243_v30 = vpop.f32.mrf.mxu1 }
 0x479   : > { %1279 = vperm.xlu1 %2166, %v1243_v30  }
 0x47a   : > { %v2061_v31 = vpop.f32.mrf.mxu1 }
 0x47c   : > { %v1248_v32 = vpop.f32.mrf.mxu1 }
 0x47d   : > { %1274 = vperm.xlu1 %2166, %v1238_v25   ;;  %1284 = vperm.xlu0 %2165, %v1248_v32  }
 0x47e   : > { %v2064_v34 = vpop.f32.mrf.mxu1 }
 0x47f   : > { %v472_v34 = vld [vmem:[%s2850_s10 + $0x18] sm:$0xff] }
 0x480   : > { %v1253_v35 = vpop.f32.mrf.mxu1  ;;  %2108 = vmatpush3.msra.mxu1 %v472_v34 }
 0x481   : > { %1289 = vperm.xlu1 %2166, %v1253_v35   ;;  %v471_v35 = vld [vmem:[%s2850_s10 + $0x10] sm:$0xff]  ;;  %2109 = vmatprep.subr.mxu1 %v2229_v1 }
 0x482   : > { %v2067_v36 = vpop.f32.mrf.mxu1  ;;  %2110 = vmatpush3.msra.mxu1 %v471_v35 }
 0x483   : > { %v470_v36 = vld [vmem:[%s2850_s10 + $0x8] sm:$0xff]  ;;  %2111 = vmatprep.subr.mxu1 %v2229_v1 }
 0x484   : > { %2112 = vmatpush3.msra.mxu1 %v470_v36 }
 0x485   : > { %1269 = vperm.xlu1 %2166, %v1233_v20   ;;  %2113 = vmatprep.subr.mxu1 %v2229_v1 }
 0x489   : > { %1264 = vperm.xlu1 %2166, %v1228_v15   ;;  %v465_v15 = vld [vmem:[%s2849_s9] sm:$0xff] }
 0x48d   : > { %1259 = vperm.xlu1 %2166, %v1223_v10   ;;  %v467_v10 = vld [vmem:[%s2849_s9 + $0x10] sm:$0xff] }
 0x4f4   : > { %v1280_v37 = vpop.permute.xlu1 %1279 }
 0x4f5   : > { %v1296_v38 = vmul.f32 %v1280_v37, %v2489_v39  ;;  %v469_v37 = vld [vmem:[%s2850_s10] sm:$0xff] }
 0x4f6   : > { %2114 = vmatpush3.msra.mxu1 %v469_v37 }
 0x4f7   : > { %v1829_v40 = vclamps-f32 %v1296_v38, 100.0 }
 0x4f8   : > { %v1275_v41 = vpop.permute.xlu1 %1274  ;;  %v1285_v42 = vpop.permute.xlu0 %1284 }
 0x4f9   : > { %v1297_v43 = vmul.f32 %v1285_v42, %v2501_v44  ;;  %1328 = vrot.lane.b32.xlu1 %v1829_v40, %s2233_s20  ;;  %v1295_v48 = vmul.f32 %v1275_v41, %v2475_v33 }
 0x4fb   : > { %v1830_v45 = vclamps-f32 %v1297_v43, 100.0  ;;  %v1828_v39 = vclamps-f32 %v1295_v48, 100.0 }
 0x4fc   : > { %v1290_v46 = vpop.permute.xlu1 %1289 }
 0x4fd   : > { %v1298_v47 = vmul.f32 %v1290_v46, %v2512_v49  ;;  %1330 = vrot.lane.b32.xlu1 %v1830_v45, %s2233_s20 }
 0x4ff   : > { %v1831_v50 = vclamps-f32 %v1298_v47, 100.0  ;;  %v452_v47 = vld [vmem:[%s2844_s4] sm:$0xff] }
 0x500   : > { %v1270_v51 = vpop.permute.xlu1 %1269 }
 0x501   : > { %1332 = vrot.lane.b32.xlu1 %v1831_v50, %s2233_s20  ;;  %v1294_v52 = vmul.f32 %v1270_v51, %v2464_v28  ;;  %v1833_v28 = vld [vmem:[%s2852_s12 + $0x6] ss:$0 sm:$0xff] }
 0x503   : > { %v1827_v44 = vclamps-f32 %v1294_v52, 100.0 }
 0x504   : > { %v1265_v53 = vpop.permute.xlu1 %1264 }
 0x505   : > { %1326 = vrot.lane.b32.xlu1 %v1828_v39, %s2233_s20  ;;  %v1293_v54 = vmul.f32 %v1265_v53, %v2452_v23 }
 0x507   : > { %v1826_v56 = vclamps-f32 %v1293_v54, 100.0 }
 0x508   : > { %v1260_v55 = vpop.permute.xlu1 %1259 }
 0x509   : > { %v1292_v49 = vmul.f32 %v1260_v55, %v2442_v17  ;;  %1324 = vrot.lane.b32.xlu1 %v1827_v44, %s2233_s20 }
 0x50b   : > { %v1825_v33 = vclamps-f32 %v1292_v49, 100.0 }
 0x50d   : > { %1322 = vrot.lane.b32.xlu1 %v1826_v56, %s2233_s20  ;;  %1320 = vrot.lane.b32.xlu0 %v1825_v33, %s2233_s20 }
 0x511   : > { %1433 = vrot.lane.b32.xlu1 %v1833_v28, %s2231_s30 }
 0x56b   : > { %v1329_v57 = vpop.permute.xlu1 %1328 }
 0x56c   : > { %v1345_v62 = vsel %vm489_vm1, %v1001_v19, %v1329_v57 }
 0x56f   : > { %v1331_v58 = vpop.permute.xlu1 %1330 }
 0x570   : > { %v1346_v59 = vsel %vm489_vm1, %v1002_v24, %v1331_v58 }
 0x573   : > { %v1333_v23 = vpop.permute.xlu1 %1332 }
 0x574   : > { %v1347_v17 = vsel %vm489_vm1, %v1003_v29, %v1333_v23  ;;  %v475_v29 = vld [vmem:[%s2851_s11 + $0x10] sm:$0xff] }
 0x575   : > { %2069 = vmatpush3.msra.mxu0 %v1347_v17 }
 0x576   : > { %2070 = vmatprep.subr.mxu0 %v2229_v1 }
 0x577   : > { %2071 = vmatpush3.msra.mxu0 %v1346_v59  ;;  %v1327_v60 = vpop.permute.xlu1 %1326 }
 0x578   : > { %2072 = vmatprep.subr.mxu0 %v2229_v1  ;;  %v1344_v26 = vsel %vm489_vm1, %v1000_v13, %v1327_v60  ;;  %v451_v13 = vld [vmem:[%s2843_s3] sm:$0xff] }
 0x579   : > { %2073 = vmatpush3.msra.mxu0 %v1345_v62 }
 0x57a   : > { %2074 = vmatprep.subr.mxu0 %v2229_v1 }
 0x57b   : > { %2075 = vmatpush3.msra.mxu0 %v1344_v26  ;;  %v1325_v21 = vpop.permute.xlu1 %1324 }
 0x57c   : > { %v1343_v24 = vsel %vm489_vm1, %v999_v9, %v1325_v21  ;;  %2076 = vmatprep.subr.mxu0 %v2229_v1  ;;  %v476_v9 = vld [vmem:[%s2851_s11 + $0x18] sm:$0xff] }
 0x57d   : > { %2077 = vmatpush3.msra.mxu0 %v1343_v24 }
 0x57e   : > { %2078 = vmatprep.subr.mxu0 %v2229_v1 }
 0x57f   : > { %v1321_v16 = vpop.permute.xlu0 %1320  ;;  %v1323_v19 = vpop.permute.xlu1 %1322 }
 0x580   : > { %v1342_v11 = vsel %vm489_vm1, %v998_v4, %v1323_v19  ;;  %v1341_v7 = vsel %vm489_vm1, %v997_v63, %v1321_v16  ;;  %v474_v63 = vld [vmem:[%s2851_s11 + $0x8] sm:$0xff] }
 0x581   : > { %2079 = vmatpush3.msra.mxu0 %v1342_v11 }
 0x582   : > { %2080 = vmatprep.subr.mxu0 %v2229_v1 }
 0x583   : > { %2081 = vmatpush3.msra.mxu0 %v1341_v7  ;;  %v1434_v2 = vpop.permute.xlu1 %1433 }
 0x584   : > { %v1436_v4 = vadd.f32 %v1434_v2, %v2434_v14  ;;  %2083 = vmatmul.mubr.msk.f32.vlgmr.msra.gmra.mxu0 %vm1348_vm5, %v451_v13  ;;  %2085 = vmatprep.subr.mxu0 %v2229_v1 }
 0x585   : > { %2086 = vmatpush3.msra.mxu0 %v476_v9  ;;  %2093 = vmatprep.mubr.msk.f32.mxu0 %vm2230_vm0, %v2229_v1 }
 0x586   : > { %v1437_v61 = vmax.f32 %v1436_v4, 0.0  ;;  %2087 = vmatprep.subr.mxu0 %v2229_v1 }
 0x587   : > { %2088 = vmatpush3.msra.mxu0 %v475_v29 }
 0x588   : > { %1443 = vrot.lane.b32.xlu0 %v1437_v61, %s2233_s20  ;;  %2089 = vmatprep.subr.mxu0 %v2229_v1 }
 0x589   : > { %2090 = vmatpush3.msra.mxu0 %v474_v63 }
 0x58a   : > { %2091 = vmatprep.subr.mxu0 %v2229_v1 }
 0x58b   : > { %2092 = vmatpush3.msra.mxu0 %v473_v0 }
 0x58c   : > { %2096 = vmatprep.subr.mxu0 %v2229_v1  ;;  %1612 = vrot.lane.b32.xlu0 %v1837_v3, %s2234_s17 }
 0x5fa   : > { %v1444_v8 = vpop.permute.xlu0 %1443 }
 0x5fb   : > { %2094 = vmatmul.mubr.msk.f32.vlgmr.msra.gmra.mxu0 %vm489_vm1, %v1444_v8 }
 0x5fc   : > { %2097 = vmatpush3.msra.mxu0 %v468_v6  ;;  %2104 = vmatprep.mubr.msk.f32.mxu0 %vm2230_vm0, %v2229_v1 }
 0x5fd   : > { %2098 = vmatprep.subr.mxu0 %v2229_v1 }
 0x5fe   : > { %2099 = vmatpush3.msra.mxu0 %v467_v10  ;;  %v1613_v38 = vpop.permute.xlu0 %1612 }
 0x5ff   : > { %2100 = vmatprep.subr.mxu0 %v2229_v1 }
 0x600   : > { %2101 = vmatpush3.msra.mxu0 %v466_v12 }
 0x601   : > { %2102 = vmatprep.subr.mxu0 %v2229_v1 }
 0x602   : > { %2103 = vmatpush3.msra.mxu0 %v465_v15 }
 0x644   : > { %v1418_v18 = vpop.f32.mrf.mxu0 }
 0x645   : > { %2105 = vmatmul.mubr.msk.f32.vlgmr.msra.gmra.mxu0 %vm489_vm1, %v1418_v18 }
 0x646   : > { %v2084_v20 = vpop.f32.mrf.mxu0 }
 0x6bb   : > { %v1513_v25 = vpop.f32.mrf.mxu0 }
 0x6bc   : > { %v1514_v27 = vadd.f32 %v1834_v22, %v1513_v25 }
 0x6bd   : > { %v2095_v30 = vpop.f32.mrf.mxu0 }
 0x6be   : > { %1519 = vperm.xlu0 %2165, %v1514_v27  }
 0x705   : > { %v1598_v31 = vpop.f32.mrf.mxu0 }
 0x706   : > { %1603 = vrot.lane.b32.xlu1 %v1598_v31, %s2234_s17 }
 0x707   : > { %v2106_v32 = vpop.f32.mrf.mxu0 }
 0x739   : > { %v1520_v40 = vpop.permute.xlu0 %1519 }
 0x73a   : > { %v1522_v41 = vmul.f32 %v1520_v40, %v2381_v5 }
 0x73c   : > { %1524 = vrot.lane.b32.xlu0 %v1522_v41, %s2235_s21  ;;  %s431_s21 = scalar_lea.vmem [#allocation2], %s1783_s15 }
 0x73d   : > { %s1720_s22 = sshll.u32 %s431_s21, 4  ;;  %s1721_s22 = int_to_ptr.vmem [resolvable:$true] %s1720_s22 }
 0x73e   : > { %s2167_s15 = scalar_lea.vmem %s1721_s22, 128  ;;  %p2174_p0 = scmp.lt.s32.totalorder %s1721_s22, %s2172_s0 }
 0x73f   : > { %p2168_p11 = scmp.ne.s32.totalorder %s1721_s22, %s2167_s15  ;;  %p2175_p1 = scmp.lt.s32.totalorder %s2173_s1, %s2167_s15 }
 0x741   : > { %p2169_p12 = pnand %p2168_p11, %p2346_p5  ;;  %p2176_p2 = por %p2175_p1, %p2174_p0 }
 0x743   : > { %p2170_p13 = pneg %p2169_p12 }
 0x745   : > { %p2177_p3 = pnand %p2176_p2, %p2170_p13 }
 0x778   : > { %v1604_v42 = vpop.permute.xlu1 %1603 }
 0x779   : > { %v1606_v43 = vadd.f32 %v1604_v42, %v2434_v14  ;;  %v1838_v14 = vld [vmem:[%s2852_s12 + $0x5] ss:$0 sm:$0xff] }
 0x77b   : > { %v1615_v45 = vadd.f32 %v1613_v38, %v1606_v43 }
 0x77d   : > { %v1616_v46 = vmax.f32 %v1615_v45, 0.0 }
 0x77f   : > { %1622 = vrot.lane.b32.xlu1 %v1616_v46, %s2234_s17  ;;  %s1841_s17 = sshll.u32 %s2329_s29, 7  ;;  %s1707_s29 = scalar_lea.sflag [#allocation3], %s429_s24 }
 0x780   : > { %s2805_s20 = scalar_lea.hbm %s2853_s13, %s1841_s17 }
 0x783   : > { %1424 = vperm.xlu1 %2166, %v452_v47  }
 0x7ae   : > { %v1525_v51 = vpop.permute.xlu0 %1524 }
 0x7f1   : > { %v1623_v1 = vpop.permute.xlu1 %1622 }
 0x7f2   : > { %2116 = vmatmul.mubr.msk.f32.vlgmr.msra.gmra.mxu1 %vm489_vm1, %v1623_v1 }
 0x7fe   : > { %v1425_v48 = vpop.permute.xlu1 %1424 }
 0x7ff   : > { %v1427_v50 = vmul.f32 %v1425_v48, %v1418_v18 }
 0x801   : > { %v1527_v39 = vadd.f32 %v1525_v51, %v1427_v50 }
 0x803   : > { %1698 = vrot.lane.b32.xlu1 %v1527_v39, %s2236_s23  ;;  %v1528_v54 = vadd.f32 %v1527_v39, %v2381_v5 }
 0x875   : > { %v1699_v49 = vpop.permute.xlu1 %1698 }
 0x8b2   : > { %v1692_v52 = vpop.f32.mrf.mxu1 }
 0x8b3   : > { %v1693_v53 = vadd.f32 %v1838_v14, %v1692_v52 }
 0x8b4   : > { %v2117_v44 = vpop.f32.mrf.mxu1 }
 0x8b5   : > { %v1696_v55 = vadd.f32 %v1693_v53, %v2381_v5 }
 0x8b7   : > { %v1701_v56 = vsel %vm489_vm1, %v1696_v55, %v1528_v54 }
 0x8b8   : > { %v1703_v33 = vsel %vm1702_vm6, %v1701_v56, %v1699_v49 }
 0x8b9   : > { %1705 = vst.msk [vmem:[%s431_s21] sm:$0xff] %vm1704_vm7, %v1703_v33 }
 0x8ba   : > { %2180 = shalt.err (!%p2177_p3)
}
 0x8bb   : > { %s2181_s17 = scalar_lea.hbm %s2805_s20, 128  ;;  %s2185_s30 = scalar_lea.hbm %s2853_s13, 256 }
 0x8bc   : > { %p2182_p4 = scmp.ne.s32.totalorder %s2805_s20, %s2181_s17  ;;  %p2186_p9 = scmp.lt.s32.totalorder %s2805_s20, %s2853_s13 }
 0x8bd   : > { %p2187_p10 = scmp.lt.s32.totalorder %s2185_s30, %s2181_s17 }
 0x8be   : > { %p2183_p7 = pnand %p2182_p4, %p2346_p5 }
 0x8bf   : > { %p2188_p11 = por %p2187_p10, %p2186_p9 }
 0x8c0   : > { %p2184_p8 = pneg %p2183_p7 }
 0x8c2   : > { %p2189_p12 = pnand %p2188_p11, %p2184_p8 }
 0x8c4   : > { %2192 = shalt.err (!%p2189_p12)
}
 0x8c5   : > { %2118 = dma.vmem_to_hbm [thread:$0]  (%p2346_p5), %s1721_s22, 128, %s2805_s20, %s1707_s29  }
 0x8c6 PF: > { %p2124_p13 = scmp.ge.s32.totalorder %s2227_s28, 2  ;;  %s1732_s0 = sand.u32 1, %s2215_s25  }
 0x8c7   : > { %s1733_s1 = scalar_lea.sflag [#allocation3], %s1732_s0 }
 0x8c8   : > { %p2121_p0 = pnand %p2124_p13, %p2350_p6 }
 0x8ca   : > { %p2122_p1 = pneg %p2121_p0 }
 0x8cc   : > { %2210 = dma.done.wait (%p2122_p1), %s1733_s1, 128  }
 0x8cd   : > { %2212 = vsyncadd (%p2122_p1), %s1733_s1, 4294967168  ;;  %s2861_s15 = sld [smem:[#allocation5_spill]]  ;;  %p23_p2 = scmp.ge.s32.totalorder %s2333_s14, 4  }
 0x8ce   : > { %s2862_s25 = smov %s2219_s26  ;;  %s2863_s26 = smov %s2223_s27 }
 0x8cf   : > { %s2865_s28 = smov %s2333_s14  ;;  %25 = sbr.rel (!%p23_p2) target bundleno = 6 (0x6), region = 107 }
 0x8d3   : > { %s2864_s27 = smov %s2861_s15 }
 0x8d4   :  { %1738 = vsyncpa [#allocation3], 1 }
 0x8d5   :  { %1740 = vsyncpa [#allocation3 + $0x1], 1 }

</bundles_post_ra>
